<compile_context>
chip_gen: v7x
topology: tpu7x:2x2x1
jax: 0.10.0
libtpu: 0.0.40
codegen_flags: <defaults>
</compile_context>

<pallas_src>
import functools

import jax
import jax.numpy as jnp
from jax import lax
from jax.experimental import pallas as pl
from jax.experimental.pallas import tpu as pltpu


# ----------------------------- schedules (glue) -----------------------------
def ddpm_schedules(beta1, beta2, T):
    """Pre-computed schedules for DDPM (same math as the PyTorch version)."""
    assert beta1 < beta2 < 1.0, "beta1 and beta2 must be in (0, 1)"
    beta_t = (beta2 - beta1) * jnp.arange(0, T + 1, dtype=jnp.float32) / T + beta1
    sqrt_beta_t = jnp.sqrt(beta_t)
    alpha_t = 1.0 - beta_t
    log_alpha_t = jnp.log(alpha_t)
    alphabar_t = jnp.exp(jnp.cumsum(log_alpha_t))
    sqrtab = jnp.sqrt(alphabar_t)
    oneover_sqrta = 1.0 / jnp.sqrt(alpha_t)
    sqrtmab = jnp.sqrt(1.0 - alphabar_t)
    mab_over_sqrtmab_inv = (1.0 - alpha_t) / sqrtmab
    return {
        "alpha_t": alpha_t,
        "oneover_sqrta": oneover_sqrta,
        "sqrt_beta_t": sqrt_beta_t,
        "alphabar_t": alphabar_t,
        "sqrtab": sqrtab,
        "sqrtmab": sqrtmab,
        "mab_over_sqrtmab": mab_over_sqrtmab_inv,
    }


# ------------------------------ sizing helpers -------------------------------
def _vmem_limit_bytes():
    """Scoped-VMEM limit derived from the actual part (v5e/v6e: 128 MiB,
    v7x: 64 MiB per TensorCore), with headroom for compiler scratch."""
    try:
        cap = int(pltpu.get_tpu_info().vmem_capacity_bytes)
    except Exception:
        cap = 64 * 1024 * 1024
    return min(100 * 1024 * 1024, (cap * 3) // 4)


def _pick_samples_per_block(B, HW, C, Hd, budget_bytes):
    """Largest divisor TB of B whose per-step working set (incl. the Hd-scaled
    hidden activation and the one-hot expander) fits the VMEM budget.  Prefers
    G = B // TB even (>= 2) so both v7x TensorCores get work, as long as the
    lane dimension stays reasonably wide."""
    if HW % 128 != 0:
        # General HW: use one full block (full-extent BlockSpec has no
        # lane-alignment constraint; the iota-based expansion handles any HW).
        return B

    def step_bytes(tb):
        tile_n = tb * HW
        return (
            2 * 2 * C * tile_n * 2            # double-buffered bf16 x / noise tiles
            + 2 * (2 + C) * tb * 4            # double-buffered scal / bias blocks
            + (tb * tile_n * 4 if tb > 1 else 0)  # one-hot expander value
            + (2 + C) * tile_n * 4            # expanded scale rows + bias tile
            + C * tile_n * 4                  # x_t value
            + Hd * tile_n * 4                 # pre-activation (f32)
            + Hd * tile_n * 2                 # hidden activation (bf16)
            + 2 * C * tile_n * 4              # eps + diff values
            + (2 * C * Hd + Hd) * 4           # weights
        )

    divisors = [d for d in range(1, B + 1) if B % d == 0]
    fitting = [d for d in divisors if step_bytes(d) <= budget_bytes] or [1]
    best = max(fitting)
    # v7x: keep both TensorCores busy when it doesn't shrink tiles too much.
    wide_even = [d for d in fitting if (B // d) % 2 == 0 and d * HW >= 1024]
    if wide_even:
        best = max(wide_even)
    elif B > 1:
        split = [d for d in fitting if (B // d) >= 2]
        if split:
            best = max(split)
    return best


# ------------------------------- Pallas kernel -------------------------------
def ddpm_forward_kernel(
    x_ref,       # VMEM (C, TB*HW) bf16   channels-major image block
    noise_ref,   # VMEM (C, TB*HW) bf16
    scal_ref,    # VMEM (1, 2, TB) f32    [sqrtab; sqrtmab] for this block
    bias_ref,    # VMEM (1, C, TB) f32    fused per-sample bias (b2+cemb+tf*temb)
    w1_ref,      # VMEM (Hd, C) f32
    b1_ref,      # VMEM (Hd, 1) f32
    w2_ref,      # VMEM (C, Hd) f32
    sse_ref,     # VMEM (1, 1, 1) f32     per-block partial sum of squared errors
    *,
    tb,          # samples per block (static)
    hw,          # H*W (static)
):
    tile_n = tb * hw
    # noise is streamed in bf16 (halved HBM traffic); arithmetic stays f32.
    x = x_ref[...].astype(jnp.float32)       # (C, tile_n)
    n = noise_ref[...].astype(jnp.float32)   # (C, tile_n)
    scal = scal_ref[0]                       # (2, TB)
    bias = bias_ref[0]                       # (C, TB)

    if tb == 1:
        # Single sample per block: plain broadcasts, no expansion needed.
        sa_row = scal[0:1, :]                # (1, 1)
        sm_row = scal[1:2, :]                # (1, 1)
        bias_tile = bias                     # (C, 1)
    else:
        # Expand per-sample scalars to per-column rows on the otherwise-idle
        # MXU via an iota-built one-hot (no integer division, no loops).
        col = lax.broadcasted_iota(jnp.int32, (tb, tile_n), 1)
        start = lax.broadcasted_iota(jnp.int32, (tb, tile_n), 0) * hw
        onehot = ((col >= start) & (col < start + hw)).astype(jnp.float32)
        scales = jnp.dot(scal, onehot, preferred_element_type=jnp.float32)   # (2, tile_n)
        sa_row = scales[0:1, :]
        sm_row = scales[1:2, :]
        bias_tile = jnp.dot(bias, onehot, preferred_element_type=jnp.float32)  # (C, tile_n)

    # 1) forward diffusion blend, fully vectorized (VPU).
    x_t = sa_row * x + sm_row * n            # (C, tile_n)

    # 2) eps-predictor stand-in: per-pixel 1x1-conv MLP, one wide MXU matmul
    #    pair over the whole block.  ReLU (VALU) replaces tanh (single-slot
    #    EUP) and the hidden activation is carried in bf16 into the MXU.
    # TODO(synk): the real nn_model (e.g. ContextUnet) is an external module
    # passed into DDPM.__init__; a deterministic 1x1-conv MLP is used here.
    pre = jnp.dot(w1_ref[...], x_t, preferred_element_type=jnp.float32) + b1_ref[...]
    h = jnp.maximum(pre, 0.0).astype(jnp.bfloat16)                     # (Hd, tile_n)
    eps = jnp.dot(w2_ref[...].astype(jnp.bfloat16), h,
                  preferred_element_type=jnp.float32) + bias_tile      # (C, tile_n)

    # 3) squared-error contribution for this block, single vectorized reduce.
    d = n - eps
    sse_ref[...] = jnp.reshape(jnp.sum(d * d), (1, 1, 1))


def ddpm_forward_loss(x_cm, noise_cm, scal_g, bias_g, params,
                      *, B, C, HW, TB, vmem_limit):
    """x_cm/noise_cm: (C, B*HW) bf16 channels-major, sample-major columns;
    scal_g: (G, 2, TB) f32; bias_g: (G, C, TB) f32."""
    assert B % TB == 0
    G = B // TB
    tile_n = TB * HW
    assert tile_n % 128 == 0 or TB == B, "blocks must be lane-aligned"
    Hd = params["w1"].shape[0]

    kernel = functools.partial(ddpm_forward_kernel, tb=TB, hw=HW)

    partials = pl.pallas_call(
        kernel,
        out_shape=jax.ShapeDtypeStruct((G, 1, 1), jnp.float32),
        grid=(G,),
        in_specs=[
            pl.BlockSpec((C, tile_n), lambda g: (0, g)),   # x     (channels-major)
            pl.BlockSpec((C, tile_n), lambda g: (0, g)),   # noise
            pl.BlockSpec((1, 2, TB), lambda g: (g, 0, 0)),  # per-block sqrtab/sqrtmab
            pl.BlockSpec((1, C, TB), lambda g: (g, 0, 0)),  # per-block fused bias
            pl.BlockSpec((Hd, C), lambda g: (0, 0)),        # w1
            pl.BlockSpec((Hd, 1), lambda g: (0, 0)),        # b1
            pl.BlockSpec((C, Hd), lambda g: (0, 0)),        # w2
        ],
        # distinct partial-SSE block per grid step -> batch axis is parallel
        out_specs=pl.BlockSpec((1, 1, 1), lambda g: (g, 0, 0)),
        compiler_params=pltpu.CompilerParams(
            dimension_semantics=("parallel",),
            vmem_limit_bytes=vmem_limit,
        ),
    )(x_cm, noise_cm, scal_g, bias_g,
      params["w1"], params["b1"], params["w2"])

    return jnp.sum(partials) / jnp.float32(B * C * HW)


# --------------------------------- DDPM glue ---------------------------------
class DDPMPallas:
    def __init__(self, params, betas, n_T, drop_prob=0.1):
        self.sched = ddpm_schedules(betas[0], betas[1], n_T)
        self.n_T = n_T
        self.drop_prob = drop_prob
        self.params = params
        self.vmem_limit = _vmem_limit_bytes()

    def forward(self, x, c, key, return_intermediates=False, tb=None):
        """x: (B, C, H, W) f32 NCHW, c: (B,) int class labels."""
        B, C, H, W = x.shape
        HW = H * W
        Hd = self.params["w1"].shape[0]
        k_ts, k_noise, k_mask = jax.random.split(key, 3)

        # random timestep / noise / context dropout mask (as in the PyTorch fwd)
        _ts = jax.random.randint(k_ts, (B,), 1, self.n_T + 1)
        noise = jax.random.normal(k_noise, x.shape, dtype=jnp.float32)
        context_mask = jax.random.bernoulli(
            k_mask, self.drop_prob, c.shape
        ).astype(jnp.float32)

        sa = self.sched["sqrtab"][_ts]
        sm = self.sched["sqrtmab"][_ts]
        tf = _ts.astype(jnp.float32) / self.n_T

        # fused per-sample bias: b2 + masked class embedding + (t/T) * temb
        cemb = self.params["class_emb"][c] * (1.0 - context_mask)[:, None]    # (B,C)
        bias = (self.params["b2"][None, :, 0] + cemb
                + tf[:, None] * self.params["temb"][None, :, 0])              # (B,C)

        if tb is None:
            TB = _pick_samples_per_block(B, HW, C, Hd, self.vmem_limit // 2)
        else:
            assert B % tb == 0
            TB = tb
        G = B // TB

        # block-major per-sample scalars / bias (tiny layout plumbing)
        scal_g = jnp.stack([sa, sm], axis=0).reshape(2, G, TB).transpose(1, 0, 2)  # (G,2,TB)
        bias_g = bias.T.reshape(C, G, TB).transpose(1, 0, 2)                        # (G,C,TB)

        # channels-major, sample-major-column bf16 layout.  NOTE: noise (the
        # regression target) is rounded to bf16 here; the loss differs from a
        # pure-f32 forward at bf16 precision (intentional HBM-traffic trade).
        x_cm = (x.reshape(B, C, HW).transpose(1, 0, 2)
                .reshape(C, B * HW).astype(jnp.bfloat16))
        noise_cm = (noise.reshape(B, C, HW).transpose(1, 0, 2)
                    .reshape(C, B * HW).astype(jnp.bfloat16))

        loss = ddpm_forward_loss(x_cm, noise_cm, scal_g, bias_g, self.params,
                                 B=B, C=C, HW=HW, TB=TB,
                                 vmem_limit=self.vmem_limit)
        if return_intermediates:
            return loss, (x_cm, noise_cm, scal_g, bias_g)
        return loss


def reference_loss(x_cm, noise_cm, scal_g, bias_g, params, *, B, C, HW):
    """Plain-JAX reference of the fused kernel (same preprocessed inputs)."""
    x = x_cm.astype(jnp.float32).reshape(C, B, HW).transpose(1, 0, 2)        # (B,C,HW)
    n = noise_cm.astype(jnp.float32).reshape(C, B, HW).transpose(1, 0, 2)
    scal = scal_g.transpose(1, 0, 2).reshape(2, B)                           # (2,B)
    sa = scal[0][:, None, None]
    sm = scal[1][:, None, None]
    bias = bias_g.transpose(1, 0, 2).reshape(C, B).T[..., None]              # (B,C,1)
    x_t = sa * x + sm * n
    pre = jnp.einsum("hc,bcp->bhp", params["w1"], x_t,
                     precision=jax.lax.Precision.HIGHEST) + params["b1"][None]
    h = jnp.maximum(pre, 0.0).astype(jnp.bfloat16)
    eps = jnp.einsum("ch,bhp->bcp", params["w2"].astype(jnp.bfloat16), h,
                     preferred_element_type=jnp.float32) + bias
    return jnp.mean((n - eps) ** 2)


# ----------------------------------- main ------------------------------------
if __name__ == "__main__":
    B, C, H, W = 2, 4, 16, 16
    HIDDEN = 32
    N_CLASSES = 10
    N_T = 400

    key = jax.random.PRNGKey(0)
    kx, kc, kp, kf = jax.random.split(key, 4)
    kw1, kw2, kce, kte = jax.random.split(kp, 4)

    x = jax.random.normal(kx, (B, C, H, W), dtype=jnp.float32)
    c = jax.random.randint(kc, (B,), 0, N_CLASSES)

    params = dict(
        w1=jax.random.normal(kw1, (HIDDEN, C), jnp.float32) * 0.1,
        b1=jnp.zeros((HIDDEN, 1), jnp.float32),
        w2=jax.random.normal(kw2, (C, HIDDEN), jnp.float32) * 0.1,
        b2=jnp.zeros((C, 1), jnp.float32),
        class_emb=jax.random.normal(kce, (N_CLASSES, C), jnp.float32) * 0.1,
        temb=jax.random.normal(kte, (C, 1), jnp.float32) * 0.1,
    )

    model = DDPMPallas(params, betas=(1e-4, 0.02), n_T=N_T, drop_prob=0.1)

    # Path 1: auto block size (TB=1, G=2 -> both v7x cores; broadcast path).
    loss1, packed = model.forward(x, c, kf, return_intermediates=True)
    loss1 = jax.block_until_ready(loss1)

    # Path 2: full block (TB=B, G=1 -> exercises the one-hot MXU expansion).
    loss2 = jax.block_until_ready(model.forward(x, c, kf, tb=B))

    ref = jax.block_until_ready(
        reference_loss(*packed, params, B=B, C=C, HW=H * W))

    assert jnp.isfinite(loss1) and jnp.isfinite(loss2), "non-finite loss"
    assert jnp.allclose(loss1, ref, rtol=1e-2, atol=1e-3), (loss1, ref)
    assert jnp.allclose(loss2, ref, rtol=1e-2, atol=1e-3), (loss2, ref)
    assert jnp.allclose(loss1, loss2, rtol=1e-2, atol=1e-3), (loss1, loss2)

    print("KERNEL_OK")
</pallas_src>

<mosaic_0001>
module attributes {stable_mosaic.version = 11 : i64} {
  func.func @ddpm_forward_kernel(%arg0: i32, %arg1: memref<4x256xbf16, #tpu.memory_space<vmem>>, %arg2: memref<4x256xbf16, #tpu.memory_space<vmem>>, %arg3: memref<1x2x1xf32, #tpu.memory_space<vmem>>, %arg4: memref<1x4x1xf32, #tpu.memory_space<vmem>>, %arg5: memref<32x4xf32, #tpu.memory_space<vmem>>, %arg6: memref<32x1xf32, #tpu.memory_space<vmem>>, %arg7: memref<4x32xf32, #tpu.memory_space<vmem>>, %arg8: memref<1x1x1xf32, #tpu.memory_space<vmem>>) attributes {dimension_semantics = [#tpu.dimension_semantics<parallel>], iteration_bounds = array<i64: 2>, scalar_prefetch = 0 : i64, scratch_operands = 0 : i64, tpu.core_type = #tpu.core_type<tc>, window_params = [{transform_indices = @transform_0, window_bounds = array<i64: 4, 256>}, {transform_indices = @transform_1, window_bounds = array<i64: 4, 256>}, {transform_indices = @transform_2, window_bounds = array<i64: 1, 2, 1>}, {transform_indices = @transform_3, window_bounds = array<i64: 1, 4, 1>}, {pipeline_mode = #tpu.pipeline_mode<synchronous>, transform_indices = @transform_4, window_bounds = array<i64: 32, 4>}, {pipeline_mode = #tpu.pipeline_mode<synchronous>, transform_indices = @transform_5, window_bounds = array<i64: 32, 1>}, {pipeline_mode = #tpu.pipeline_mode<synchronous>, transform_indices = @transform_6, window_bounds = array<i64: 4, 32>}, {transform_indices = @transform_7, window_bounds = array<i64: 1, 1, 1>}]} {
    %c0 = arith.constant 0 : index
    %c0_0 = arith.constant 0 : index
    %0 = vector.load %arg1[%c0, %c0_0] : memref<4x256xbf16, #tpu.memory_space<vmem>>, vector<4x256xbf16>
    %1 = arith.extf %0 : vector<4x256xbf16> to vector<4x256xf32>
    %c0_1 = arith.constant 0 : index
    %c0_2 = arith.constant 0 : index
    %2 = vector.load %arg2[%c0_1, %c0_2] : memref<4x256xbf16, #tpu.memory_space<vmem>>, vector<4x256xbf16>
    %3 = arith.extf %2 : vector<4x256xbf16> to vector<4x256xf32>
    %c0_3 = arith.constant 0 : index
    %c0_4 = arith.constant 0 : index
    %c0_5 = arith.constant 0 : index
    %4 = vector.load %arg3[%c0_3, %c0_4, %c0_5] : memref<1x2x1xf32, #tpu.memory_space<vmem>>, vector<1x2x1xf32>
    %5 = vector.shape_cast %4 : vector<1x2x1xf32> to vector<2x1xf32>
    %c0_6 = arith.constant 0 : index
    %c0_7 = arith.constant 0 : index
    %c0_8 = arith.constant 0 : index
    %6 = vector.load %arg4[%c0_6, %c0_7, %c0_8] : memref<1x4x1xf32, #tpu.memory_space<vmem>>, vector<1x4x1xf32>
    %7 = vector.shape_cast %6 : vector<1x4x1xf32> to vector<4x1xf32>
    %8 = vector.extract_strided_slice %5 {offsets = [0, 0], sizes = [1, 1], strides = [1, 1]} : vector<2x1xf32> to vector<1x1xf32>
    %9 = vector.extract_strided_slice %5 {offsets = [1, 0], sizes = [1, 1], strides = [1, 1]} : vector<2x1xf32> to vector<1x1xf32>
    %10 = vector.broadcast %8 : vector<1x1xf32> to vector<4x256xf32>
    %11 = arith.mulf %10, %1 : vector<4x256xf32>
    %12 = vector.broadcast %9 : vector<1x1xf32> to vector<4x256xf32>
    %13 = arith.mulf %12, %3 : vector<4x256xf32>
    %14 = arith.addf %11, %13 : vector<4x256xf32>
    %c0_9 = arith.constant 0 : index
    %c0_10 = arith.constant 0 : index
    %15 = vector.load %arg5[%c0_9, %c0_10] : memref<32x4xf32, #tpu.memory_space<vmem>>, vector<32x4xf32>
    %cst = arith.constant dense<0.000000e+00> : vector<32x256xf32>
    %16 = tpu.matmul %15, %14, %cst {dimension_numbers = #tpu.dot_dimension_numbers<[1], [0], [0], [1], [0, 0, 1, 1], [], []>} : vector<32x4xf32>, vector<4x256xf32>, vector<32x256xf32> -> vector<32x256xf32>
    %c0_11 = arith.constant 0 : index
    %c0_12 = arith.constant 0 : index
    %17 = vector.load %arg6[%c0_11, %c0_12] : memref<32x1xf32, #tpu.memory_space<vmem>>, vector<32x1xf32>
    %18 = vector.broadcast %17 : vector<32x1xf32> to vector<32x256xf32>
    %19 = arith.addf %16, %18 : vector<32x256xf32>
    %cst_13 = arith.constant 0.000000e+00 : f32
    %20 = vector.broadcast %cst_13 : f32 to vector<32x256xf32>
    %21 = arith.maximumf %19, %20 : vector<32x256xf32>
    %22 = arith.truncf %21 : vector<32x256xf32> to vector<32x256xbf16>
    %c0_14 = arith.constant 0 : index
    %c0_15 = arith.constant 0 : index
    %23 = vector.load %arg7[%c0_14, %c0_15] : memref<4x32xf32, #tpu.memory_space<vmem>>, vector<4x32xf32>
    %24 = arith.truncf %23 : vector<4x32xf32> to vector<4x32xbf16>
    %cst_16 = arith.constant dense<0.000000e+00> : vector<4x256xf32>
    %25 = tpu.matmul %24, %22, %cst_16 {dimension_numbers = #tpu.dot_dimension_numbers<[1], [0], [0], [1], [0, 0, 1, 1], [], []>} : vector<4x32xbf16>, vector<32x256xbf16>, vector<4x256xf32> -> vector<4x256xf32>
    %26 = vector.broadcast %7 : vector<4x1xf32> to vector<4x256xf32>
    %27 = arith.addf %25, %26 : vector<4x256xf32>
    %28 = arith.subf %3, %27 : vector<4x256xf32>
    %29 = arith.mulf %28, %28 : vector<4x256xf32>
    %30 = vector.shape_cast %29 : vector<4x256xf32> to vector<1x4x256xf32>
    %cst_17 = arith.constant dense<0.000000e+00> : vector<1xf32>
    %31 = vector.multi_reduction <add>, %30, %cst_17 [1, 2] : vector<1x4x256xf32> to vector<1xf32>
    %32 = vector.shape_cast %31 : vector<1xf32> to vector<1x1x1xf32>
    %33 = vector.extract %32[0, 0, 0] : f32 from vector<1x1x1xf32>
    %34 = vector.broadcast %33 : f32 to vector<1x1x1xf32>
    %c0_18 = arith.constant 0 : index
    %c0_19 = arith.constant 0 : index
    %c0_20 = arith.constant 0 : index
    %35 = vector.load %arg8[%c0_18, %c0_19, %c0_20] : memref<1x1x1xf32, #tpu.memory_space<vmem>>, vector<1x1x1xf32>
    tpu.vector_store %arg8[%c0_18, %c0_19, %c0_20], %34 {strides = array<i32>} : memref<1x1x1xf32, #tpu.memory_space<vmem>>, vector<1x1x1xf32>,
    return
  }
  func.func @transform_0(%arg0: i32) -> (i32, i32) {
    %c0_i32 = arith.constant 0 : i32
    %c0_i32_0 = arith.constant 0 : i32
    return %c0_i32, %arg0 : i32, i32
  }
  func.func @transform_1(%arg0: i32) -> (i32, i32) {
    %c0_i32 = arith.constant 0 : i32
    %c0_i32_0 = arith.constant 0 : i32
    return %c0_i32, %arg0 : i32, i32
  }
  func.func @transform_2(%arg0: i32) -> (i32, i32, i32) {
    %c0_i32 = arith.constant 0 : i32
    %c0_i32_0 = arith.constant 0 : i32
    %c0_i32_1 = arith.constant 0 : i32
    return %arg0, %c0_i32, %c0_i32_0 : i32, i32, i32
  }
  func.func @transform_3(%arg0: i32) -> (i32, i32, i32) {
    %c0_i32 = arith.constant 0 : i32
    %c0_i32_0 = arith.constant 0 : i32
    %c0_i32_1 = arith.constant 0 : i32
    return %arg0, %c0_i32, %c0_i32_0 : i32, i32, i32
  }
  func.func @transform_4(%arg0: i32) -> (i32, i32) {
    %c0_i32 = arith.constant 0 : i32
    %c0_i32_0 = arith.constant 0 : i32
    %c0_i32_1 = arith.constant 0 : i32
    return %c0_i32, %c0_i32_0 : i32, i32
  }
  func.func @transform_5(%arg0: i32) -> (i32, i32) {
    %c0_i32 = arith.constant 0 : i32
    %c0_i32_0 = arith.constant 0 : i32
    %c0_i32_1 = arith.constant 0 : i32
    return %c0_i32, %c0_i32_0 : i32, i32
  }
  func.func @transform_6(%arg0: i32) -> (i32, i32) {
    %c0_i32 = arith.constant 0 : i32
    %c0_i32_0 = arith.constant 0 : i32
    %c0_i32_1 = arith.constant 0 : i32
    return %c0_i32, %c0_i32_0 : i32, i32
  }
  func.func @transform_7(%arg0: i32) -> (i32, i32, i32) {
    %c0_i32 = arith.constant 0 : i32
    %c0_i32_0 = arith.constant 0 : i32
    %c0_i32_1 = arith.constant 0 : i32
    return %arg0, %c0_i32, %c0_i32_0 : i32, i32, i32
  }
}

</mosaic_0001>

<bundles_post_ra>
// kernel: tpu_custom_call.1
= control target key start
LH: loop header
LB: loop body
LE: loop exit
PB: predicated region body
PF: predicated region fallthrough
CT: control target
= control target key end

     0   :  { %s747_s24 = smov 0   ;;  %s821_s0 = inlined_call_operand.vmem [shape: bf16[4,512], index: 0, kind: input, shape index: {}]   ;;  %s822_s1 = inlined_call_operand.vmem [shape: bf16[4,512], index: 1, kind: input, shape index: {}]   ;;  %s823_s2 = inlined_call_operand.vmem [shape: f32[2,2,1], index: 2, kind: input, shape index: {}]   ;;  %s824_s3 = inlined_call_operand.vmem [shape: f32[2,4,1], index: 3, kind: input, shape index: {}]   ;;  %s825_s4 = inlined_call_operand.vmem [shape: f32[32,4], index: 4, kind: input, shape index: {}]   ;;  %s826_s5 = inlined_call_operand.vmem [shape: f32[32,1], index: 5, kind: input, shape index: {}]   ;;  %s827_s6 = inlined_call_operand.vmem [shape: f32[4,32], index: 6, kind: input, shape index: {}]   ;;  %s828_s7 = inlined_call_operand.vmem [shape: f32[2,1,1], index: 7, kind: output, shape index: {}]  }
   0x1 LB: > { %s753_s25 = sadd.s32 4294967295, %s703_s24   ;;  %p663_p0 = scmp.ge.s32.totalorder %s703_s24, 1  ;;  %s703_s24 = sphi %s747_s24, %s17_s24  }
   0x2   : > { %p267_p1 = scmp.lt.s32.totalorder %s703_s24, 3 }
   0x4   : > { %p268_p2 = pnand %p663_p0, %p267_p1 }
   0x5   : > { %p322_p3 = scmp.lt.s32.totalorder (!%p268_p2), %s753_s25, 1  ;;  %v705_v0 = vmov (!%p268_p2), 0.0   ;;  %v706_v1 = vmov (!%p268_p2), 0   ;;  %v355_v2 = vld [vmem:[%s826_s5] sm:$0xff] (!%p268_p2)  ;;  %v357_v3 = vld [vmem:[%s826_s5 + $0x10] sm:$0xff] (!%p268_p2)  ;;  %v356_v4 = vld [vmem:[%s826_s5 + $0x8] sm:$0xff] (!%p268_p2) }
   0x6   : > { %271 = sbr.rel (%p268_p2) target bundleno = 746 (0x2ea), region = 48  ;;  %463 = vmatprep.mubr.f32.mxu0 (!%p268_p2), %v705_v0  ;;  %695 = vset.pattern.permute.xlu0 (!%p268_p2), %v706_v1  ;;  %v358_v5 = vld [vmem:[%s826_s5 + $0x18] sm:$0xff] (!%p268_p2)  ;;  %s664_s20 = sshll.u32 (!%p268_p2), %s753_s25, 1  ;;  %vm394_vm0 = vcmask (!%p268_p2), 1043456   ;;  %v351_v19 = vld [vmem:[%s825_s4] sm:$0xff] (!%p268_p2)  ;;  %vm381_vm1 = vcmask (!%p268_p2), 31744  }
   0x7   : > { %696 = vset.pattern.permute.xlu1 (!%p268_p2), %v706_v1  ;;  %361 = vperm.xlu0 (!%p268_p2), %695, %v355_v2   ;;  %p311_p4 = scmp.lt.s32.totalorder (!%p268_p2), %s664_s20, 3  ;;  %v352_v20 = vld [vmem:[%s825_s4 + $0x8] sm:$0xff] (!%p268_p2)  ;;  %v353_v21 = vld [vmem:[%s825_s4 + $0x10] sm:$0xff] (!%p268_p2)  ;;  %v354_v22 = vld [vmem:[%s825_s4 + $0x18] sm:$0xff] (!%p268_p2)  ;;  %vm507_vm2 = vcmask (!%p268_p2), 261120   ;;  %vm574_vm3 = vcmask (!%p268_p2), 0  }
   0x8   : > { %371 = vperm.xlu1 (!%p268_p2), %696, %v357_v3   ;;  %543 = vmatprep.mubr.bf16.mxu1 (!%p268_p2), %v706_v1  ;;  %v500_v54 = vld [vmem:[%s827_s6] sm:$0xf] (!%p268_p2) }
   0x9   : > { %v501_v56 = vpack.c.bf16 (!%p268_p2), %v500_v54, %v500_v54 }
   0xb   : > { %366 = vperm.xlu0 (!%p268_p2), %695, %v356_v4  }
   0xc   : > { %376 = vperm.xlu1 (!%p268_p2), %696, %v358_v5  }
   0xd   : > { %s759_s26 = scalar_select %p322_p3, %s753_s25, 1 }
   0xe   : > { %s830_s20 = smov (!%p311_p4, %s664_s20), 3 }
   0xf   : > { %s668_s8 = sshll.u32 %s759_s26, 1  ;;  %s669_s11 = sshll.u32 %s759_s26, 2 }
  0x10   : > { %s325_s16 = scalar_lea.vmem %s823_s2, %s668_s8  ;;  %s329_s19 = scalar_lea.vmem %s824_s3, %s669_s11 }
  0x11   : > { %v338_v6 = vld [vmem:[%s325_s16] sm:$0x3]  ;;  %s665_s21 = sshll.u32 %s830_s20, 1 }
  0x12   : > { %679 = vpush %v338_v6  ;;  %v345_v7 = vrot.slane %v338_v6, 1  ;;  %v339_v8 = vld [vmem:[%s329_s19] sm:$0xf]  ;;  %s314_s27 = scalar_lea.vmem %s821_s0, %s665_s21  ;;  %s320_s30 = scalar_lea.vmem %s822_s1, %s665_s21 }
  0x13   : > { %504 = vperm.xlu0 %695, %v339_v8   ;;  %v334_v9 = vld [vmem:[%s314_s27] sm:$0xf]  ;;  %s332_s21 = scalar_lea.vmem %s828_s7, %s759_s26 }
  0x14   : > { %681 = vpush %v345_v7  ;;  %v788_v10 = vld [vmem:[%s320_s30] sm:$0xf]  ;;  %v335_v11 = vunpack.c.l.bf16 %v334_v9 }
  0x15   : > { %v337_v12 = vunpack.c.l.bf16 %v788_v10 }
  0x43   : > { %s680_s8 = spop %679 }
  0x44   : > { %v342_v13 = vstv %s680_s8 }
  0x45   : > { %v344_v14 = vmul.f32 %v342_v13, %v335_v11  ;;  %s682_s25 = spop %681 }
  0x46   : > { %v347_v15 = vstv %s682_s25 }
  0x47   : > { %v349_v16 = vmul.f32 %v347_v15, %v337_v12 }
  0x49   : > { %v350_v17 = vadd.f32 %v349_v16, %v344_v14 }
  0x4b   : > { %v380_v18 = vcombine.high %v350_v17, %v350_v17 }
  0x4d   : > { %670 = vmatprep.subr.msk.mxu0 %vm394_vm0, %v380_v18 }
  0x4e   : > { %671 = vmatpush1.msk.msra.mxu0 %vm394_vm0, %v350_v17 }
  0x4f   : > { %672 = vmatmul.mubr.msk.f32.vlgmr.msra.gmra.mrb[0].mxu0 %vm381_vm1, %v351_v19 }
  0x50   : > { %469 = vmatprep.mubr.f32.mxu0 %v705_v0 }
  0x53   : > { %673 = vmatmul.mubr.msk.f32.gmra.mrb[2].mxu0 %vm381_vm1, %v352_v20 }
  0x54   : > { %475 = vmatprep.mubr.f32.mxu0 %v705_v0 }
  0x57   : > { %674 = vmatmul.mubr.msk.f32.gmra.mrb[4].mxu0 %vm381_vm1, %v353_v21 }
  0x58   : > { %481 = vmatprep.mubr.f32.mxu0 %v705_v0 }
  0x5b   : > { %675 = vmatmul.mubr.msk.f32.gmra.mrb[6].mxu0 %vm381_vm1, %v354_v22 }
  0x86   : > { %v362_v23 = vpop.permute.xlu0 %361 }
  0x87   : > { %v372_v32 = vpop.permute.xlu1 %371 }
  0x8a   : > { %v367_v27 = vpop.permute.xlu0 %366 }
  0x8b   : > { %v377_v43 = vpop.permute.xlu1 %376 }
  0x92   : > { %v505_v57 = vpop.permute.xlu0 %504 }
 0x122   : > { %v465_v24 = vpop.f32.mrb[0].mxu0 }
 0x123   : > { %v467_v25 = vpop.f32.mrb[1].mxu0  ;;  %v466_v26 = vadd.f32 %v465_v24, %v362_v23 }
 0x124   : > { %v468_v28 = vadd.f32 %v467_v25, %v362_v23 }
 0x125   : > { %v488_v34 = vmax.f32 %v466_v26, 0.0 }
 0x126   : > { %v471_v29 = vpop.f32.mrb[2].mxu0  ;;  %v489_v36 = vmax.f32 %v468_v28, 0.0 }
 0x127   : > { %v472_v30 = vadd.f32 %v471_v29, %v367_v27  ;;  %v473_v31 = vpop.f32.mrb[3].mxu0 }
 0x128   : > { %v474_v33 = vadd.f32 %v473_v31, %v367_v27 }
 0x129   : > { %v490_v35 = vmax.f32 %v472_v30, 0.0 }
 0x12a   : > { %v491_v37 = vmax.f32 %v474_v33, 0.0  ;;  %v477_v38 = vpop.f32.mrb[4].mxu0 }
 0x12b   : > { %v479_v39 = vpop.f32.mrb[5].mxu0  ;;  %v496_v40 = vpack.c.bf16 %v490_v35, %v488_v34  ;;  %v478_v42 = vadd.f32 %v477_v38, %v372_v32 }
 0x12c   : > { %v497_v41 = vpack.c.bf16 %v491_v37, %v489_v36  ;;  %v480_v44 = vadd.f32 %v479_v39, %v372_v32 }
 0x12d   : > { %v492_v49 = vmax.f32 %v478_v42, 0.0 }
 0x12e   : > { %v483_v45 = vpop.f32.mrb[6].mxu0  ;;  %511 = vmatprep.subr.bf16.mxu1 %v497_v41  ;;  %v493_v51 = vmax.f32 %v480_v44, 0.0 }
 0x12f   : > { %v484_v46 = vadd.f32 %v483_v45, %v377_v43  ;;  %v485_v47 = vpop.f32.mrb[7].mxu0  ;;  %512 = vmatpush1.bf16.msra.mxu1 %v496_v40 }
 0x130   : > { %v486_v48 = vadd.f32 %v485_v47, %v377_v43 }
 0x131   : > { %v494_v50 = vmax.f32 %v484_v46, 0.0 }
 0x132   : > { %v495_v52 = vmax.f32 %v486_v48, 0.0 }
 0x133   : > { %v498_v53 = vpack.c.bf16 %v494_v50, %v492_v49 }
 0x134   : > { %v499_v55 = vpack.c.bf16 %v495_v52, %v493_v51 }
 0x136   : > { %513 = vmatprep.subr.bf16.mxu1 %v499_v55 }
 0x137   : > { %514 = vmatpush1.bf16.msra.mxu1 %v498_v53 }
 0x13a   : > { %676 = vmatmul.mubr.msk.bf16.vlgmr.msra.gmra.mrb[0].mxu1 %vm507_vm2, %v501_v56 }
 0x20d   : > { %v545_v58 = vpop.f32.mrb[0].mxu1 }
 0x20e   : > { %v546_v59 = vadd.f32 %v545_v58, %v505_v57  ;;  %v547_v60 = vpop.f32.mrb[1].mxu1 }
 0x20f   : > { %v548_v61 = vadd.f32 %v547_v60, %v505_v57  ;;  %v549_v62 = vpop.f32.mrb[2].mxu1 }
 0x210   : > { %v550_v63 = vpop.f32.mrb[3].mxu1 }
 0x211   : > { %v554_v0 = vcombine.low %v546_v59, %v548_v61 }
 0x213   : > { %v556_v1 = vsub.f32 %v337_v12, %v554_v0 }
 0x215   : > { %v557_v2 = vmul.f32 %v556_v1, %v556_v1 }
 0x217   : > { %v559_v3 = vcombine.high %v557_v2, %v557_v2  ;;  %v561_v4 = vsel %vm394_vm0, %v557_v2, 0.0 }
 0x219   : > { %v562_v5 = vsel %vm394_vm0, %v559_v3, 0.0 }
 0x21a   : > { %v563_v6 = vadd.f32 %v562_v5, %v561_v4 }
 0x21c   : > { %564 = vadd.xlane.f32.xlu1 %v563_v6 }
 0x2a9   : > { %v565_v7 = vpop.xlane.xlu1 %564 }
 0x2aa   : > { %v566_v8 = vrot.slane %v565_v7, 4 }
 0x2ac   : > { %v567_v9 = vadd.f32 %v566_v8, %v565_v7 }
 0x2ae   : > { %v568_v11 = vrot.slane %v567_v9, 2 }
 0x2b0   : > { %v569_v13 = vadd.f32 %v568_v11, %v567_v9 }
 0x2b2   : > { %v570_v14 = vrot.slane %v569_v13, 1 }
 0x2b4   : > { %v571_v15 = vadd.f32 %v570_v14, %v569_v13 }
 0x2b6   : > { %683 = vpush %v571_v15 }
 0x2e7   : > { %s684_s22 = spop %683 }
 0x2e8   : > { %v573_v10 = vstv %s684_s22 }
 0x2e9   : > { %575 = vst.msk [vmem:[%s332_s21] sm:$0x1] %vm574_vm3, %v573_v10 }
 0x2ea PF: > { %s17_s24 = sadd.s32 1, %s703_s24  }
 0x2eb   : > { %p14_p5 = scmp.ge.s32.totalorder %s17_s24, 4  }
 0x2ed   :  { %16 = sbr.rel (!%p14_p5) target bundleno = 1 (0x1), region = 87 }

</bundles_post_ra>
